<compile_context>
chip_gen: v7x
topology: tpu7x:2x2x1
jax: 0.10.0
libtpu: 0.0.40
codegen_flags: <defaults>
</compile_context>

<pallas_src>
import functools
import math

import jax
import jax.numpy as jnp
from jax.experimental import pallas as pl
from jax.experimental.pallas import tpu as pltpu


def _round_up(x, m):
    return ((x + m - 1) // m) * m


def _mlp2_fused_kernel(x_ref, w1_ref, w2_ref, w3_ref, o_ref):
    """One (tm, Cp) output tile of the full 3-layer MLP.

    x_ref : (tm, Dp) activation tile.
    w1_ref: (Dp, Wp), w2_ref: (Wp, Wp), w3_ref: (Wp, Cp) -- weights already
            transposed to (in, out), zero-padded, and (for w3) pre-scaled by
            1/(sqrt(width)*gamma0).  All fully resident in VMEM.
    Intermediates stay in VMEM/vregs; nothing round-trips to HBM.
    """
    h = jnp.dot(x_ref[...], w1_ref[...], preferred_element_type=jnp.float32)
    h = jnp.maximum(h, 0.0)
    h = jnp.dot(h, w2_ref[...], preferred_element_type=jnp.float32)
    h = jnp.maximum(h, 0.0)
    y = jnp.dot(h, w3_ref[...], preferred_element_type=jnp.float32)
    o_ref[...] = y.astype(o_ref.dtype)


@functools.partial(jax.jit, static_argnames=("D", "num_classes", "tm_max"))
def _mlp2_forward_impl(x, w1p, w2p, w3p, *, D, num_classes, tm_max):
    b = x.shape[0]
    h = x.reshape(b, -1)                       # torch.flatten(x, 1)
    assert h.shape[1] == D

    Dp, Wp = w1p.shape
    Cp = w3p.shape[1]

    tm = min(tm_max, _round_up(b, 8))          # sublane-aligned batch tile
    Mp = _round_up(b, tm)
    if Mp != b or Dp != D:
        h = jnp.pad(h, ((0, Mp - b), (0, Dp - D)))

    out = pl.pallas_call(
        _mlp2_fused_kernel,
        out_shape=jax.ShapeDtypeStruct((Mp, Cp), x.dtype),
        grid=(Mp // tm,),
        in_specs=[
            pl.BlockSpec((tm, Dp), lambda i: (i, 0)),   # activation tile
            pl.BlockSpec((Dp, Wp), lambda i: (0, 0)),   # resident w1
            pl.BlockSpec((Wp, Wp), lambda i: (0, 0)),   # resident w2
            pl.BlockSpec((Wp, Cp), lambda i: (0, 0)),   # resident w3 (scaled)
        ],
        out_specs=pl.BlockSpec((tm, Cp), lambda i: (i, 0)),
        compiler_params=pltpu.CompilerParams(
            # Batch tiles are independent -> megacore sharding on v7x once
            # there are >=2 tiles; harmless at grid (1,).
            dimension_semantics=("parallel",),
        ),
    )(h, w1p, w2p, w3p)

    return out[:b, :num_classes]


def make_mlp2_forward(w1, w2, w3, *, gamma0=1.0, tm_max=256):
    """Prepare weights once and return a jitted MLP_2 forward function.

    w1: (width, D), w2: (width, width), w3: (num_classes, width) in
    nn.Linear (out, in) layout, exactly as in the PyTorch module.
    """
    width, D = w1.shape
    assert w2.shape == (width, width)
    num_classes, w3_in = w3.shape
    assert w3_in == width

    Dp = _round_up(D, 128)
    Wp = _round_up(width, 128)
    Cp = _round_up(num_classes, 128)

    # One-time weight prep, outside the forward path:
    #   transpose to (in, out), zero-pad, fold FinalLinear + gamma0 scale.
    w1p = jnp.zeros((Dp, Wp), w1.dtype).at[:D, :width].set(w1.T)
    w2p = jnp.zeros((Wp, Wp), w2.dtype).at[:width, :width].set(w2.T)
    w3_scaled = w3.T / (math.sqrt(width) * gamma0)
    w3p = jnp.zeros((Wp, Cp), w3.dtype).at[:width, :num_classes].set(w3_scaled)

    # Double-buffered resident-weight footprint; keep well under the smallest
    # default scoped-VMEM limit (v5e: 16 MiB).  Larger widths would need the
    # tiled per-layer path instead of this fused kernel.
    weight_bytes = 2 * 4 * (Dp * Wp + Wp * Wp + Wp * Cp)
    assert weight_bytes < 12 * 1024 * 1024, (
        "weights too large for the fused resident-weight kernel")

    def forward(x):
        return _mlp2_forward_impl(x, w1p, w2p, w3p,
                                  D=D, num_classes=num_classes, tm_max=tm_max)

    return forward


if __name__ == "__main__":
    key = jax.random.PRNGKey(0)
    kx, k1, k2, k3 = jax.random.split(key, 4)

    batch, channels, spatial = 8, 1, 16
    D = channels * spatial * spatial          # 256 after flatten
    width = 256
    num_classes = 10
    gamma0 = 2.0

    x = jax.random.normal(kx, (batch, channels, spatial, spatial),
                          dtype=jnp.float32)
    # init.normal_(weight, 0, 1/sqrt(in_features)), bias=False.
    w1 = jax.random.normal(k1, (width, D), dtype=jnp.float32) / math.sqrt(D)
    w2 = jax.random.normal(k2, (width, width), dtype=jnp.float32) / math.sqrt(width)
    w3 = jax.random.normal(k3, (num_classes, width), dtype=jnp.float32) / math.sqrt(width)

    forward = make_mlp2_forward(w1, w2, w3, gamma0=gamma0)
    y = forward(x)
    jax.block_until_ready(y)

    # Plain-JAX reference of MLP_2.forward.
    h = x.reshape(batch, -1)
    h = jnp.maximum(h @ w1.T, 0.0)
    h = jnp.maximum(h @ w2.T, 0.0)
    y_ref = (h @ w3.T) / math.sqrt(width) / gamma0

    assert y.shape == (batch, num_classes)
    assert jnp.allclose(y, y_ref, atol=1e-4, rtol=1e-4)

    print("KERNEL_OK")
</pallas_src>

<mosaic_0001>
module attributes {stable_mosaic.version = 11 : i64} {
  func.func @_mlp2_fused_kernel(%arg0: i32, %arg1: memref<8x256xf32, #tpu.memory_space<vmem>>, %arg2: memref<256x256xf32, #tpu.memory_space<vmem>>, %arg3: memref<256x256xf32, #tpu.memory_space<vmem>>, %arg4: memref<256x128xf32, #tpu.memory_space<vmem>>, %arg5: memref<8x128xf32, #tpu.memory_space<vmem>>) attributes {dimension_semantics = [#tpu.dimension_semantics<parallel>], iteration_bounds = array<i64: 1>, scalar_prefetch = 0 : i64, scratch_operands = 0 : i64, tpu.core_type = #tpu.core_type<tc>, window_params = [{transform_indices = @transform_0, window_bounds = array<i64: 8, 256>}, {pipeline_mode = #tpu.pipeline_mode<synchronous>, transform_indices = @transform_1, window_bounds = array<i64: 256, 256>}, {pipeline_mode = #tpu.pipeline_mode<synchronous>, transform_indices = @transform_2, window_bounds = array<i64: 256, 256>}, {pipeline_mode = #tpu.pipeline_mode<synchronous>, transform_indices = @transform_3, window_bounds = array<i64: 256, 128>}, {transform_indices = @transform_4, window_bounds = array<i64: 8, 128>}]} {
    %c0 = arith.constant 0 : index
    %c0_0 = arith.constant 0 : index
    %0 = vector.load %arg1[%c0, %c0_0] : memref<8x256xf32, #tpu.memory_space<vmem>>, vector<8x256xf32>
    %c0_1 = arith.constant 0 : index
    %c0_2 = arith.constant 0 : index
    %1 = vector.load %arg2[%c0_1, %c0_2] : memref<256x256xf32, #tpu.memory_space<vmem>>, vector<256x256xf32>
    %cst = arith.constant dense<0.000000e+00> : vector<8x256xf32>
    %2 = tpu.matmul %0, %1, %cst {dimension_numbers = #tpu.dot_dimension_numbers<[1], [0], [0], [1], [0, 0, 1, 1], [], []>} : vector<8x256xf32>, vector<256x256xf32>, vector<8x256xf32> -> vector<8x256xf32>
    %cst_3 = arith.constant 0.000000e+00 : f32
    %3 = vector.broadcast %cst_3 : f32 to vector<8x256xf32>
    %4 = arith.maximumf %2, %3 : vector<8x256xf32>
    %c0_4 = arith.constant 0 : index
    %c0_5 = arith.constant 0 : index
    %5 = vector.load %arg3[%c0_4, %c0_5] : memref<256x256xf32, #tpu.memory_space<vmem>>, vector<256x256xf32>
    %cst_6 = arith.constant dense<0.000000e+00> : vector<8x256xf32>
    %6 = tpu.matmul %4, %5, %cst_6 {dimension_numbers = #tpu.dot_dimension_numbers<[1], [0], [0], [1], [0, 0, 1, 1], [], []>} : vector<8x256xf32>, vector<256x256xf32>, vector<8x256xf32> -> vector<8x256xf32>
    %cst_7 = arith.constant 0.000000e+00 : f32
    %7 = vector.broadcast %cst_7 : f32 to vector<8x256xf32>
    %8 = arith.maximumf %6, %7 : vector<8x256xf32>
    %c0_8 = arith.constant 0 : index
    %c0_9 = arith.constant 0 : index
    %9 = vector.load %arg4[%c0_8, %c0_9] : memref<256x128xf32, #tpu.memory_space<vmem>>, vector<256x128xf32>
    %cst_10 = arith.constant dense<0.000000e+00> : vector<8x128xf32>
    %10 = tpu.matmul %8, %9, %cst_10 {dimension_numbers = #tpu.dot_dimension_numbers<[1], [0], [0], [1], [0, 0, 1, 1], [], []>} : vector<8x256xf32>, vector<256x128xf32>, vector<8x128xf32> -> vector<8x128xf32>
    %c0_11 = arith.constant 0 : index
    %c0_12 = arith.constant 0 : index
    %11 = vector.load %arg5[%c0_11, %c0_12] : memref<8x128xf32, #tpu.memory_space<vmem>>, vector<8x128xf32>
    tpu.vector_store %arg5[%c0_11, %c0_12], %10 {strides = array<i32>} : memref<8x128xf32, #tpu.memory_space<vmem>>, vector<8x128xf32>,
    return
  }
  func.func @transform_0(%arg0: i32) -> (i32, i32) {
    %c0_i32 = arith.constant 0 : i32
    %c0_i32_0 = arith.constant 0 : i32
    return %arg0, %c0_i32 : i32, i32
  }
  func.func @transform_1(%arg0: i32) -> (i32, i32) {
    %c0_i32 = arith.constant 0 : i32
    %c0_i32_0 = arith.constant 0 : i32
    %c0_i32_1 = arith.constant 0 : i32
    return %c0_i32, %c0_i32_0 : i32, i32
  }
  func.func @transform_2(%arg0: i32) -> (i32, i32) {
    %c0_i32 = arith.constant 0 : i32
    %c0_i32_0 = arith.constant 0 : i32
    %c0_i32_1 = arith.constant 0 : i32
    return %c0_i32, %c0_i32_0 : i32, i32
  }
  func.func @transform_3(%arg0: i32) -> (i32, i32) {
    %c0_i32 = arith.constant 0 : i32
    %c0_i32_0 = arith.constant 0 : i32
    %c0_i32_1 = arith.constant 0 : i32
    return %c0_i32, %c0_i32_0 : i32, i32
  }
  func.func @transform_4(%arg0: i32) -> (i32, i32) {
    %c0_i32 = arith.constant 0 : i32
    %c0_i32_0 = arith.constant 0 : i32
    return %arg0, %c0_i32 : i32, i32
  }
}

</mosaic_0001>

<bundles_post_ra>
// kernel: _mlp2_forward_impl.1
= control target key start
LH: loop header
LB: loop body
LE: loop exit
PB: predicated region body
PF: predicated region fallthrough
CT: control target
= control target key end

     0   :  { %9 = vsyncpa [#allocation3], 0  ;;  %s845_s0 = inlined_call_operand.vmem [shape: f32[8,256], index: 0, kind: input, shape index: {}]   ;;  %s846_s1 = inlined_call_operand.hbm [shape: f32[256,256], index: 1, kind: input, shape index: {}]   ;;  %s847_s2 = inlined_call_operand.hbm [shape: f32[256,256], index: 2, kind: input, shape index: {}]   ;;  %s848_s3 = inlined_call_operand.hbm [shape: f32[256,128], index: 3, kind: input, shape index: {}]   ;;  %s849_s4 = inlined_call_operand.hbm [shape: f32[8,128], index: 4, kind: output, shape index: {}]  }
   0x1   :  { %10 = vsyncpa [#allocation6], 0 }
   0x2   :  { %11 = vsyncpa [#allocation4], 0  ;;  %s751_s15 = smov [#allocation5]   ;;  %s752_s17 = smov [#allocation2]  }
   0x3   :  { %s31_s16 = sshll.u32 %s751_s15, 4  ;;  %s19_s18 = sshll.u32 %s752_s17, 4  ;;  %s32_s16 = int_to_ptr.vmem [resolvable:$true] %s31_s16  ;;  %s784_s18 = int_to_ptr.vmem [resolvable:$true] %s19_s18 }
   0x4   :  { %s657_s21 = scalar_lea.hbm %s847_s2, 8192 }
   0x5   :  { %p658_p0 = scmp.ne.s32.totalorder %s847_s2, %s657_s21  ;;  %p661_p1 = scmp.lt.u32.totalorder %s657_s21, %s847_s2 }
   0x7   :  { %p663_p2 = pnand %p661_p1, %p658_p0 }
   0x9   :  { %666 = shalt.err (!%p663_p2)
}
   0xa   :  { %s667_s26 = scalar_lea.vmem %s32_s16, 8192  ;;  %p672_p4 = scmp.lt.s32.totalorder %s32_s16, %s32_s16 }
   0xb   :  { %p668_p3 = scmp.ne.s32.totalorder %s32_s16, %s667_s26  ;;  %p673_p5 = scmp.lt.s32.totalorder %s667_s26, %s667_s26 }
   0xd   :  { %p674_p6 = por %p673_p5, %p672_p4 }
   0xf   :  { %p675_p7 = pnand %p674_p6, %p668_p3 }
  0x11   :  { %678 = shalt.err (!%p675_p7)
}
  0x12   :  { %s753_s27 = smov 256   ;;  %s754_s28 = smov 16  }
  0x13   :  { %37 = dma.hbm_to_vmem [thread:$0]  %s847_s2, 8192, %s32_s16, [#allocation6], %s753_s27, %s753_s27, %s754_s28  }
  0x14   :  { %s679_s7 = scalar_lea.hbm %s846_s1, 8192 }
  0x15   :  { %p680_p8 = scmp.ne.s32.totalorder %s846_s1, %s679_s7  ;;  %p683_p9 = scmp.lt.u32.totalorder %s679_s7, %s846_s1 }
  0x17   :  { %p685_p10 = pnand %p683_p9, %p680_p8 }
  0x19   :  { %688 = shalt.err (!%p685_p10)
}
  0x1a   :  { %s689_s12 = scalar_lea.vmem %s784_s18, 8192  ;;  %p694_p12 = scmp.lt.s32.totalorder %s784_s18, %s784_s18 }
  0x1b   :  { %p690_p11 = scmp.ne.s32.totalorder %s784_s18, %s689_s12  ;;  %p695_p13 = scmp.lt.s32.totalorder %s689_s12, %s689_s12 }
  0x1d   :  { %p696_p0 = por %p695_p13, %p694_p12 }
  0x1f   :  { %p697_p1 = pnand %p696_p0, %p690_p11 }
  0x21   :  { %700 = shalt.err (!%p697_p1)
}
  0x22   :  { %25 = dma.hbm_to_vmem [thread:$0]  %s846_s1, 8192, %s784_s18, [#allocation3], %s753_s27, %s753_s27, %s754_s28  }
  0x23   :  { %s755_s14 = smov [#allocation7]   ;;  %s701_s19 = scalar_lea.hbm %s848_s3, 4096 }
  0x24   :  { %s43_s15 = sshll.u32 %s755_s14, 4  ;;  %p702_p2 = scmp.ne.s32.totalorder %s848_s3, %s701_s19  ;;  %s44_s15 = int_to_ptr.vmem [resolvable:$true] %s43_s15 }
  0x25   :  { %p705_p3 = scmp.lt.u32.totalorder %s701_s19, %s848_s3 }
  0x27   :  { %p707_p4 = pnand %p705_p3, %p702_p2 }
  0x29   :  { %710 = shalt.err (!%p707_p4)
}
  0x2a   :  { %s711_s24 = scalar_lea.vmem %s44_s15, 4096  ;;  %p716_p6 = scmp.lt.s32.totalorder %s44_s15, %s44_s15 }
  0x2b   :  { %p712_p5 = scmp.ne.s32.totalorder %s44_s15, %s711_s24  ;;  %p717_p7 = scmp.lt.s32.totalorder %s711_s24, %s711_s24 }
  0x2d   :  { %p718_p8 = por %p717_p7, %p716_p6 }
  0x2f   :  { %p719_p9 = pnand %p718_p8, %p712_p5 }
  0x31   :  { %722 = shalt.err (!%p719_p9)
}
  0x32   :  { %s756_s1 = smov 128   ;;  %s757_s18 = smov 8  }
  0x33   :  { %49 = dma.hbm_to_vmem [thread:$0]  %s848_s3, 4096, %s44_s15, [#allocation6], %s756_s1, %s756_s1, %s757_s18  }
  0x34   :  { %745 = dma.done.wait [#allocation3], 8192  }
  0x35   :  { %746 = vsyncadd [#allocation3], 4294959104 }
  0x36   :  { %747 = dma.done.wait [#allocation6], 12288  }
  0x37   :  { %748 = vsyncadd [#allocation6], 4294955008  ;;  %v62_v0 = vld [vmem:[#allocation2 + $0x8] sm:$0xff]  ;;  %v64_v1 = vld [vmem:[#allocation2 + $0x18] sm:$0xff] }
  0x38   :  { %v61_v2 = vld [vmem:[#allocation2] sm:$0xff]  ;;  %v489_v3 = vpack.c.bf16 %v64_v1, %v62_v0  ;;  %v63_v4 = vld [vmem:[#allocation2 + $0x10] sm:$0xff]  ;;  %v66_v5 = vld [vmem:[#allocation2 + $0x28] sm:$0xff] }
  0x39   :  { %v68_v6 = vld [vmem:[#allocation2 + $0x38] sm:$0xff]  ;;  %v491_v7 = vpack.c.bf16 %v63_v4, %v61_v2  ;;  %v65_v9 = vld [vmem:[#allocation2 + $0x20] sm:$0xff]  ;;  %v67_v10 = vld [vmem:[#allocation2 + $0x30] sm:$0xff] }
  0x3a   :  { %v493_v8 = vpack.c.bf16 %v68_v6, %v66_v5  ;;  %v70_v11 = vld [vmem:[#allocation2 + $0x48] sm:$0xff]  ;;  %490 = vmatprep.subr.bf16.mxu0 %v489_v3  ;;  %v72_v12 = vld [vmem:[#allocation2 + $0x58] sm:$0xff]  ;;  %v495_v13 = vpack.c.bf16 %v67_v10, %v65_v9  ;;  %v69_v15 = vld [vmem:[#allocation2 + $0x40] sm:$0xff] }
  0x3b   :  { %492 = vmatpush1.bf16.msra.mxu0 %v491_v7  ;;  %v497_v14 = vpack.c.bf16 %v72_v12, %v70_v11  ;;  %v71_v16 = vld [vmem:[#allocation2 + $0x50] sm:$0xff]  ;;  %v74_v17 = vld [vmem:[#allocation2 + $0x68] sm:$0xff]  ;;  %v76_v18 = vld [vmem:[#allocation2 + $0x78] sm:$0xff] }
  0x3c   :  { %494 = vmatprep.subr.bf16.mxu0 %v493_v8  ;;  %v499_v19 = vpack.c.bf16 %v71_v16, %v69_v15  ;;  %v501_v20 = vpack.c.bf16 %v76_v18, %v74_v17  ;;  %v73_v21 = vld [vmem:[#allocation2 + $0x60] sm:$0xff]  ;;  %v75_v22 = vld [vmem:[#allocation2 + $0x70] sm:$0xff]  ;;  %v78_v23 = vld [vmem:[#allocation2 + $0x88] sm:$0xff] }
  0x3d   :  { %v80_v24 = vld [vmem:[#allocation2 + $0x98] sm:$0xff]  ;;  %v503_v25 = vpack.c.bf16 %v75_v22, %v73_v21  ;;  %v77_v27 = vld [vmem:[#allocation2 + $0x80] sm:$0xff]  ;;  %v79_v28 = vld [vmem:[#allocation2 + $0x90] sm:$0xff] }
  0x3e   :  { %v505_v26 = vpack.c.bf16 %v80_v24, %v78_v23  ;;  %v82_v29 = vld [vmem:[#allocation2 + $0xa8] sm:$0xff]  ;;  %v84_v30 = vld [vmem:[#allocation2 + $0xb8] sm:$0xff]  ;;  %v507_v31 = vpack.c.bf16 %v79_v28, %v77_v27  ;;  %v81_v33 = vld [vmem:[#allocation2 + $0xa0] sm:$0xff] }
  0x3f   :  { %496 = vmatpush1.bf16.msra.mxu0 %v495_v13  ;;  %v509_v32 = vpack.c.bf16 %v84_v30, %v82_v29  ;;  %v83_v34 = vld [vmem:[#allocation2 + $0xb0] sm:$0xff]  ;;  %v86_v35 = vld [vmem:[#allocation2 + $0xc8] sm:$0xff]  ;;  %v88_v36 = vld [vmem:[#allocation2 + $0xd8] sm:$0xff] }
  0x40   :  { %498 = vmatprep.subr.bf16.mxu0 %v497_v14  ;;  %v511_v37 = vpack.c.bf16 %v83_v34, %v81_v33  ;;  %v85_v38 = vld [vmem:[#allocation2 + $0xc0] sm:$0xff]  ;;  %v87_v39 = vld [vmem:[#allocation2 + $0xd0] sm:$0xff]  ;;  %v513_v40 = vpack.c.bf16 %v88_v36, %v86_v35  ;;  %v90_v41 = vld [vmem:[#allocation2 + $0xe8] sm:$0xff] }
  0x41   :  { %v92_v42 = vld [vmem:[#allocation2 + $0xf8] sm:$0xff]  ;;  %v60_v43 = vld [vmem:[%s845_s0 + $0x8] sm:$0xff]  ;;  %v198_v46 = vld [vmem:[#allocation5] sm:$0xff]  ;;  %v515_v51 = vpack.c.bf16 %v87_v39, %v85_v38 }
  0x42   :  { %189 = vmatprep.mubr.f32.mxu0 %v60_v43  ;;  %v199_v44 = vld [vmem:[#allocation5 + $0x8] sm:$0xff]  ;;  %v201_v45 = vld [vmem:[#allocation5 + $0x18] sm:$0xff]  ;;  %v200_v48 = vld [vmem:[#allocation5 + $0x10] sm:$0xff]  ;;  %v517_v57 = vpack.c.bf16 %v92_v42, %v90_v41 }
  0x43   :  { %500 = vmatpush1.bf16.msra.mxu0 %v499_v19  ;;  %v553_v47 = vpack.c.bf16 %v201_v45, %v199_v44  ;;  %v203_v49 = vld [vmem:[#allocation5 + $0x28] sm:$0xff]  ;;  %v205_v50 = vld [vmem:[#allocation5 + $0x38] sm:$0xff]  ;;  %v555_v52 = vpack.c.bf16 %v200_v48, %v198_v46  ;;  %v202_v54 = vld [vmem:[#allocation5 + $0x20] sm:$0xff] }
  0x44   :  { %502 = vmatprep.subr.bf16.mxu0 %v501_v20  ;;  %v557_v53 = vpack.c.bf16 %v205_v50, %v203_v49  ;;  %v204_v55 = vld [vmem:[#allocation5 + $0x30] sm:$0xff]  ;;  %v207_v56 = vld [vmem:[#allocation5 + $0x48] sm:$0xff]  ;;  %v89_v58 = vld [vmem:[#allocation2 + $0xe0] sm:$0xff] }
  0x45   :  { %v91_v59 = vld [vmem:[#allocation2 + $0xf0] sm:$0xff]  ;;  %554 = vmatprep.subr.bf16.mxu1 %v553_v47  ;;  %v209_v60 = vld [vmem:[#allocation5 + $0x58] sm:$0xff]  ;;  %v94_v61 = vld [vmem:[#allocation2 + $0x108] sm:$0xff]  ;;  %v559_v63 = vpack.c.bf16 %v204_v55, %v202_v54 }
  0x46   :  { %v96_v62 = vld [vmem:[#allocation2 + $0x118] sm:$0xff]  ;;  %556 = vmatpush1.bf16.msra.mxu1 %v555_v52  ;;  %v561_v0 = vpack.c.bf16 %v209_v60, %v207_v56  ;;  %v206_v1 = vld [vmem:[#allocation5 + $0x40] sm:$0xff]  ;;  %v208_v2 = vld [vmem:[#allocation5 + $0x50] sm:$0xff]  ;;  %v519_v3 = vpack.c.bf16 %v91_v59, %v89_v58 }
  0x47   :  { %504 = vmatpush1.bf16.msra.mxu0 %v503_v25  ;;  %558 = vmatprep.subr.bf16.mxu1 %v557_v53  ;;  %v211_v4 = vld [vmem:[#allocation5 + $0x68] sm:$0xff]  ;;  %v213_v5 = vld [vmem:[#allocation5 + $0x78] sm:$0xff]  ;;  %v521_v6 = vpack.c.bf16 %v96_v62, %v94_v61  ;;  %v93_v7 = vld [vmem:[#allocation2 + $0x100] sm:$0xff]  ;;  %v563_v11 = vpack.c.bf16 %v208_v2, %v206_v1 }
  0x48   :  { %506 = vmatprep.subr.bf16.mxu0 %v505_v26  ;;  %v95_v8 = vld [vmem:[#allocation2 + $0x110] sm:$0xff]  ;;  %v98_v9 = vld [vmem:[#allocation2 + $0x128] sm:$0xff]  ;;  %v100_v10 = vld [vmem:[#allocation2 + $0x138] sm:$0xff]  ;;  %v565_v12 = vpack.c.bf16 %v213_v5, %v211_v4 }
  0x49   :  { %v210_v13 = vld [vmem:[#allocation5 + $0x60] sm:$0xff]  ;;  %v212_v14 = vld [vmem:[#allocation5 + $0x70] sm:$0xff]  ;;  %v523_v15 = vpack.c.bf16 %v95_v8, %v93_v7  ;;  %v215_v16 = vld [vmem:[#allocation5 + $0x88] sm:$0xff]  ;;  %v525_v18 = vpack.c.bf16 %v100_v10, %v98_v9 }
  0x4a   :  { %560 = vmatpush1.bf16.msra.mxu1 %v559_v63  ;;  %v217_v17 = vld [vmem:[#allocation5 + $0x98] sm:$0xff]  ;;  %v97_v19 = vld [vmem:[#allocation2 + $0x120] sm:$0xff]  ;;  %v99_v20 = vld [vmem:[#allocation2 + $0x130] sm:$0xff]  ;;  %v567_v23 = vpack.c.bf16 %v212_v14, %v210_v13 }
  0x4b   :  { %508 = vmatpush1.bf16.msra.mxu0 %v507_v31  ;;  %562 = vmatprep.subr.bf16.mxu1 %v561_v0  ;;  %v102_v21 = vld [vmem:[#allocation2 + $0x148] sm:$0xff]  ;;  %v104_v22 = vld [vmem:[#allocation2 + $0x158] sm:$0xff]  ;;  %v569_v24 = vpack.c.bf16 %v217_v17, %v215_v16  ;;  %v214_v25 = vld [vmem:[#allocation5 + $0x80] sm:$0xff]  ;;  %v527_v27 = vpack.c.bf16 %v99_v20, %v97_v19 }
  0x4c   :  { %510 = vmatprep.subr.bf16.mxu0 %v509_v32  ;;  %v216_v26 = vld [vmem:[#allocation5 + $0x90] sm:$0xff]  ;;  %v219_v28 = vld [vmem:[#allocation5 + $0xa8] sm:$0xff]  ;;  %v221_v29 = vld [vmem:[#allocation5 + $0xb8] sm:$0xff]  ;;  %v529_v30 = vpack.c.bf16 %v104_v22, %v102_v21 }
  0x4d   :  { %v101_v31 = vld [vmem:[#allocation2 + $0x140] sm:$0xff]  ;;  %v103_v32 = vld [vmem:[#allocation2 + $0x150] sm:$0xff]  ;;  %v106_v33 = vld [vmem:[#allocation2 + $0x168] sm:$0xff]  ;;  %v571_v35 = vpack.c.bf16 %v216_v26, %v214_v25  ;;  %v573_v36 = vpack.c.bf16 %v221_v29, %v219_v28 }
  0x4e   :  { %564 = vmatpush1.bf16.msra.mxu1 %v563_v11  ;;  %v108_v34 = vld [vmem:[#allocation2 + $0x178] sm:$0xff]  ;;  %v220_v38 = vld [vmem:[#allocation5 + $0xb0] sm:$0xff]  ;;  %v531_v39 = vpack.c.bf16 %v103_v32, %v101_v31  ;;  %v105_v43 = vld [vmem:[#allocation2 + $0x160] sm:$0xff] }
  0x4f   :  { %512 = vmatpush1.bf16.msra.mxu0 %v511_v37  ;;  %566 = vmatprep.subr.bf16.mxu1 %v565_v12  ;;  %v218_v37 = vld [vmem:[#allocation5 + $0xa0] sm:$0xff]  ;;  %v225_v41 = vld [vmem:[#allocation5 + $0xd8] sm:$0xff]  ;;  %v533_v42 = vpack.c.bf16 %v108_v34, %v106_v33  ;;  %v107_v44 = vld [vmem:[#allocation2 + $0x170] sm:$0xff] }
  0x50   :  { %514 = vmatprep.subr.bf16.mxu0 %v513_v40  ;;  %v223_v40 = vld [vmem:[#allocation5 + $0xc8] sm:$0xff]  ;;  %v112_v46 = vld [vmem:[#allocation2 + $0x198] sm:$0xff]  ;;  %v575_v47 = vpack.c.bf16 %v220_v38, %v218_v37  ;;  %v222_v49 = vld [vmem:[#allocation5 + $0xc0] sm:$0xff] }
  0x51   :  { %v110_v45 = vld [vmem:[#allocation2 + $0x188] sm:$0xff]  ;;  %v577_v48 = vpack.c.bf16 %v225_v41, %v223_v40  ;;  %v224_v50 = vld [vmem:[#allocation5 + $0xd0] sm:$0xff]  ;;  %v229_v53 = vld [vmem:[#allocation5 + $0xf8] sm:$0xff] }
  0x52   :  { %568 = vmatpush1.bf16.msra.mxu1 %v567_v23  ;;  %v227_v52 = vld [vmem:[#allocation5 + $0xe8] sm:$0xff]  ;;  %v537_v54 = vpack.c.bf16 %v112_v46, %v110_v45  ;;  %v109_v55 = vld [vmem:[#allocation2 + $0x180] sm:$0xff]  ;;  %v111_v56 = vld [vmem:[#allocation2 + $0x190] sm:$0xff]  ;;  %v579_v59 = vpack.c.bf16 %v224_v50, %v222_v49 }
  0x53   :  { %516 = vmatpush1.bf16.msra.mxu0 %v515_v51  ;;  %570 = vmatprep.subr.bf16.mxu1 %v569_v24  ;;  %v535_v51 = vpack.c.bf16 %v107_v44, %v105_v43  ;;  %v116_v58 = vld [vmem:[#allocation2 + $0x1b8] sm:$0xff]  ;;  %v581_v60 = vpack.c.bf16 %v229_v53, %v227_v52  ;;  %v226_v61 = vld [vmem:[#allocation5 + $0xe0] sm:$0xff]  ;;  %v228_v62 = vld [vmem:[#allocation5 + $0xf0] sm:$0xff]  ;;  %v539_v63 = vpack.c.bf16 %v111_v56, %v109_v55 }
  0x54   :  { %518 = vmatprep.subr.bf16.mxu0 %v517_v57  ;;  %v114_v57 = vld [vmem:[#allocation2 + $0x1a8] sm:$0xff]  ;;  %v233_v1 = vld [vmem:[#allocation5 + $0x118] sm:$0xff]  ;;  %v115_v4 = vld [vmem:[#allocation2 + $0x1b0] sm:$0xff]  ;;  %v583_v7 = vpack.c.bf16 %v228_v62, %v226_v61 }
  0x55   :  { %v231_v0 = vld [vmem:[#allocation5 + $0x108] sm:$0xff]  ;;  %v541_v2 = vpack.c.bf16 %v116_v58, %v114_v57  ;;  %v230_v9 = vld [vmem:[#allocation5 + $0x100] sm:$0xff]  ;;  %v232_v10 = vld [vmem:[#allocation5 + $0x110] sm:$0xff] }
  0x56   :  { %572 = vmatpush1.bf16.msra.mxu1 %v571_v35  ;;  %v118_v5 = vld [vmem:[#allocation2 + $0x1c8] sm:$0xff]  ;;  %v585_v8 = vpack.c.bf16 %v233_v1, %v231_v0  ;;  %v237_v13 = vld [vmem:[#allocation5 + $0x138] sm:$0xff]  ;;  %v119_v16 = vld [vmem:[#allocation2 + $0x1d0] sm:$0xff]  ;;  %v587_v19 = vpack.c.bf16 %v232_v10, %v230_v9 }
  0x57   :  { %520 = vmatpush1.bf16.msra.mxu0 %v519_v3  ;;  %574 = vmatprep.subr.bf16.mxu1 %v573_v36  ;;  %v113_v3 = vld [vmem:[#allocation2 + $0x1a0] sm:$0xff]  ;;  %v235_v12 = vld [vmem:[#allocation5 + $0x128] sm:$0xff]  ;;  %v236_v22 = vld [vmem:[#allocation5 + $0x130] sm:$0xff] }
  0x58   :  { %522 = vmatprep.subr.bf16.mxu0 %v521_v6  ;;  %v120_v6 = vld [vmem:[#allocation2 + $0x1d8] sm:$0xff]  ;;  %v543_v11 = vpack.c.bf16 %v115_v4, %v113_v3  ;;  %v122_v17 = vld [vmem:[#allocation2 + $0x1e8] sm:$0xff]  ;;  %v589_v20 = vpack.c.bf16 %v237_v13, %v235_v12  ;;  %v234_v21 = vld [vmem:[#allocation5 + $0x120] sm:$0xff] }
  0x59   :  { %v545_v14 = vpack.c.bf16 %v120_v6, %v118_v5  ;;  %v239_v24 = vld [vmem:[#allocation5 + $0x148] sm:$0xff]  ;;  %v241_v25 = vld [vmem:[#allocation5 + $0x158] sm:$0xff]  ;;  %v123_v28 = vld [vmem:[#allocation2 + $0x1f0] sm:$0xff]  ;;  %v591_v29 = vpack.c.bf16 %v236_v22, %v234_v21 }
  0x5a   :  { %576 = vmatpush1.bf16.msra.mxu1 %v575_v47  ;;  %v238_v31 = vld [vmem:[#allocation5 + $0x140] sm:$0xff]  ;;  %v240_v32 = vld [vmem:[#allocation5 + $0x150] sm:$0xff]  ;;  %v243_v34 = vld [vmem:[#allocation5 + $0x168] sm:$0xff] }
  0x5b   :  { %524 = vmatpush1.bf16.msra.mxu0 %v523_v15  ;;  %578 = vmatprep.subr.bf16.mxu1 %v577_v48  ;;  %v117_v15 = vld [vmem:[#allocation2 + $0x1c0] sm:$0xff]  ;;  %v245_v35 = vld [vmem:[#allocation5 + $0x178] sm:$0xff]  ;;  %v595_v36 = vpack.c.bf16 %v240_v32, %v238_v31  ;;  %v247_v41 = vld [vmem:[#allocation5 + $0x188] sm:$0xff] }
  0x5c   :  { %526 = vmatprep.subr.bf16.mxu0 %v525_v18  ;;  %v124_v18 = vld [vmem:[#allocation2 + $0x1f8] sm:$0xff]  ;;  %v547_v23 = vpack.c.bf16 %v119_v16, %v117_v15  ;;  %v597_v37 = vpack.c.bf16 %v245_v35, %v243_v34  ;;  %v242_v38 = vld [vmem:[#allocation5 + $0x160] sm:$0xff]  ;;  %v248_v46 = vld [vmem:[#allocation5 + $0x190] sm:$0xff] }
  0x5d   :  { %v549_v26 = vpack.c.bf16 %v124_v18, %v122_v17  ;;  %v59_v40 = vld [vmem:[%s845_s0] sm:$0xff]  ;;  %v251_v47 = vld [vmem:[#allocation5 + $0x1a8] sm:$0xff]  ;;  %v253_v48 = vld [vmem:[#allocation5 + $0x1b8] sm:$0xff]  ;;  %s758_s0 = smov [#allocation8]  }
  0x5e   :  { %580 = vmatpush1.bf16.msra.mxu1 %v579_v59  ;;  %v246_v45 = vld [vmem:[#allocation5 + $0x180] sm:$0xff]  ;;  %v605_v50 = vpack.c.bf16 %v253_v48, %v251_v47  ;;  %v252_v52 = vld [vmem:[#allocation5 + $0x1b0] sm:$0xff]  ;;  %v255_v53 = vld [vmem:[#allocation5 + $0x1c8] sm:$0xff]  ;;  %s444_s30 = sshll.u32 %s758_s0, 4  ;;  %s445_s30 = int_to_ptr.vmem [resolvable:$true] %s444_s30 }
  0x5f   :  { %528 = vmatpush1.bf16.msra.mxu0 %v527_v27  ;;  %582 = vmatprep.subr.bf16.mxu1 %v581_v60  ;;  %v121_v27 = vld [vmem:[#allocation2 + $0x1e0] sm:$0xff]  ;;  %v603_v49 = vpack.c.bf16 %v248_v46, %v246_v45  ;;  %v256_v58 = vld [vmem:[#allocation5 + $0x1d0] sm:$0xff]  ;;  %v259_v60 = vld [vmem:[#allocation5 + $0x1e8] sm:$0xff]  ;;  %s723_s5 = scalar_lea.vmem %s445_s30, 128  ;;  %p728_p11 = scmp.lt.s32.totalorder %s445_s30, %s445_s30 }
  0x60   :  { %530 = vmatprep.subr.bf16.mxu0 %v529_v30  ;;  %v593_v30 = vpack.c.bf16 %v241_v25, %v239_v24  ;;  %v551_v33 = vpack.c.bf16 %v123_v28, %v121_v27  ;;  %v254_v57 = vld [vmem:[#allocation5 + $0x1c0] sm:$0xff]  ;;  %v261_v61 = vld [vmem:[#allocation5 + $0x1f8] sm:$0xff]  ;;  %v260_v0 = vld [vmem:[#allocation5 + $0x1f0] sm:$0xff]  ;;  %p724_p10 = scmp.ne.s32.totalorder %s445_s30, %s723_s5  ;;  %p729_p12 = scmp.lt.s32.totalorder %s723_s5, %s723_s5 }
  0x61   :  { %v611_v59 = vpack.c.bf16 %v256_v58, %v254_v57  ;;  %v613_v62 = vpack.c.bf16 %v261_v61, %v259_v60  ;;  %v352_v3 = vld [vmem:[#allocation7 + $0x88] sm:$0xff]  ;;  %v335_v4 = vld [vmem:[#allocation7] sm:$0xff]  ;;  %v338_v12 = vld [vmem:[#allocation7 + $0x18] sm:$0xff] }
  0x62   :  { %584 = vmatpush1.bf16.msra.mxu1 %v583_v7  ;;  %v336_v6 = vld [vmem:[#allocation7 + $0x8] sm:$0xff]  ;;  %v353_v7 = vld [vmem:[#allocation7 + $0x90] sm:$0xff]  ;;  %v355_v13 = vld [vmem:[#allocation7 + $0xa0] sm:$0xff]  ;;  %p730_p13 = por %p729_p12, %p728_p11 }
  0x63   :  { %532 = vmatpush1.bf16.msra.mxu0 %v531_v39  ;;  %586 = vmatprep.subr.bf16.mxu1 %v585_v8  ;;  %v244_v39 = vld [vmem:[#allocation5 + $0x170] sm:$0xff]  ;;  %v354_v8 = vld [vmem:[#allocation7 + $0x98] sm:$0xff]  ;;  %v619_v9 = vpack.c.bf16 %v336_v6, %v335_v4  ;;  %v339_v17 = vld [vmem:[#allocation7 + $0x20] sm:$0xff] }
  0x64   :  { %534 = vmatprep.subr.bf16.mxu0 %v533_v42  ;;  %v249_v42 = vld [vmem:[#allocation5 + $0x198] sm:$0xff]  ;;  %v599_v43 = vpack.c.bf16 %v244_v39, %v242_v38  ;;  %v621_v10 = vpack.c.bf16 %v354_v8, %v353_v7  ;;  %v340_v18 = vld [vmem:[#allocation7 + $0x28] sm:$0xff]  ;;  %v359_v25 = vld [vmem:[#allocation7 + $0xc0] sm:$0xff]  ;;  %p731_p0 = pnand %p730_p13, %p724_p10 }
  0x65   :  { %v601_v44 = vpack.c.bf16 %v249_v42, %v247_v41  ;;  %v627_v21 = vpack.c.bf16 %v340_v18, %v339_v17  ;;  %v342_v24 = vld [vmem:[#allocation7 + $0x38] sm:$0xff]  ;;  %v361_v31 = vld [vmem:[#allocation7 + $0xd0] sm:$0xff]  ;;  %v364_v38 = vld [vmem:[#allocation7 + $0xe8] sm:$0xff] }
  0x66   :  { %588 = vmatpush1.bf16.msra.mxu1 %v587_v19  ;;  %v357_v19 = vld [vmem:[#allocation7 + $0xb0] sm:$0xff]  ;;  %v362_v32 = vld [vmem:[#allocation7 + $0xd8] sm:$0xff]  ;;  %v347_v41 = vld [vmem:[#allocation7 + $0x60] sm:$0xff] }
  0x67   :  { %536 = vmatpush1.bf16.msra.mxu0 %v535_v51  ;;  %590 = vmatprep.subr.bf16.mxu1 %v589_v20  ;;  %v250_v51 = vld [vmem:[#allocation5 + $0x1a0] sm:$0xff]  ;;  %v358_v20 = vld [vmem:[#allocation7 + $0xb8] sm:$0xff]  ;;  %v637_v34 = vpack.c.bf16 %v362_v32, %v361_v31  ;;  %v345_v35 = vld [vmem:[#allocation7 + $0x50] sm:$0xff] }
  0x68   :  { %538 = vmatprep.subr.bf16.mxu0 %v537_v54  ;;  %v257_v54 = vld [vmem:[#allocation5 + $0x1d8] sm:$0xff]  ;;  %v607_v55 = vpack.c.bf16 %v252_v52, %v250_v51  ;;  %v629_v22 = vpack.c.bf16 %v358_v20, %v357_v19  ;;  %v348_v42 = vld [vmem:[#allocation7 + $0x68] sm:$0xff]  ;;  %v365_v48 = vld [vmem:[#allocation7 + $0xf0] sm:$0xff] }
  0x69   :  { %v609_v56 = vpack.c.bf16 %v257_v54, %v255_v53  ;;  %v349_v51 = vld [vmem:[#allocation7 + $0x70] sm:$0xff]  ;;  %v350_v52 = vld [vmem:[#allocation7 + $0x78] sm:$0xff] }
  0x6a   :  { %592 = vmatpush1.bf16.msra.mxu1 %v591_v29  ;;  %v343_v29 = vld [vmem:[#allocation7 + $0x40] sm:$0xff]  ;;  %v647_v53 = vpack.c.bf16 %v350_v52, %v349_v51 }
  0x6b   :  { %540 = vmatpush1.bf16.msra.mxu0 %v539_v63  ;;  %594 = vmatprep.subr.bf16.mxu1 %v593_v30  ;;  %v258_v63 = vld [vmem:[#allocation5 + $0x1e0] sm:$0xff]  ;;  %v344_v30 = vld [vmem:[#allocation7 + $0x48] sm:$0xff] }
  0x6c   :  { %542 = vmatprep.subr.bf16.mxu0 %v541_v2  ;;  %v615_v1 = vpack.c.bf16 %v260_v0, %v258_v63  ;;  %v351_v2 = vld [vmem:[#allocation7 + $0x80] sm:$0xff] }
  0x6d   :  { %v617_v5 = vpack.c.bf16 %v352_v3, %v351_v2 }
  0x6e   :  { %596 = vmatpush1.bf16.msra.mxu1 %v595_v36  ;;  %v346_v36 = vld [vmem:[#allocation7 + $0x58] sm:$0xff] }
  0x6f   :  { %544 = vmatpush1.bf16.msra.mxu0 %v543_v11  ;;  %598 = vmatprep.subr.bf16.mxu1 %v597_v37  ;;  %v337_v11 = vld [vmem:[#allocation7 + $0x10] sm:$0xff]  ;;  %v363_v37 = vld [vmem:[#allocation7 + $0xe0] sm:$0xff]  ;;  %v639_v39 = vpack.c.bf16 %v346_v36, %v345_v35 }
  0x70   :  { %546 = vmatprep.subr.bf16.mxu0 %v545_v14  ;;  %v356_v14 = vld [vmem:[#allocation7 + $0xa8] sm:$0xff]  ;;  %v623_v15 = vpack.c.bf16 %v338_v12, %v337_v11 }
  0x71   :  { %v625_v16 = vpack.c.bf16 %v356_v14, %v355_v13 }
  0x72   :  { %600 = vmatpush1.bf16.msra.mxu1 %v599_v43  ;;  %v643_v43 = vpack.c.bf16 %v348_v42, %v347_v41 }
  0x73   :  { %548 = vmatpush1.bf16.msra.mxu0 %v547_v23  ;;  %602 = vmatprep.subr.bf16.mxu1 %v601_v44  ;;  %v341_v23 = vld [vmem:[#allocation7 + $0x30] sm:$0xff] }
  0x74   :  { %550 = vmatprep.subr.bf16.mxu0 %v549_v26  ;;  %v360_v26 = vld [vmem:[#allocation7 + $0xc8] sm:$0xff]  ;;  %v631_v27 = vpack.c.bf16 %v342_v24, %v341_v23 }
  0x75   :  { %v633_v28 = vpack.c.bf16 %v360_v26, %v359_v25 }
  0x76   :  { %604 = vmatpush1.bf16.msra.mxu1 %v603_v49  ;;  %v366_v49 = vld [vmem:[#allocation7 + $0xf8] sm:$0xff] }
  0x77   :  { %552 = vmatpush1.bf16.msra.mxu0 %v551_v33  ;;  %606 = vmatprep.subr.bf16.mxu1 %v605_v50  ;;  %v635_v33 = vpack.c.bf16 %v344_v30, %v343_v29  ;;  %v645_v50 = vpack.c.bf16 %v366_v49, %v365_v48 }
  0x78   :  { %618 = vmatprep.subr.bf16.mxu0 %v617_v5 }
  0x7a   :  { %190 = vmatmul.mubr.f32.vlgmr.msra.gmra.mrb[0].mxu0 %v59_v40  ;;  %608 = vmatpush1.bf16.msra.mxu1 %v607_v55  ;;  %v641_v40 = vpack.c.bf16 %v364_v38, %v363_v37 }
  0x7b   :  { %610 = vmatprep.subr.bf16.mxu1 %v609_v56  ;;  %620 = vmatpush3.bf16.msra.mxu0 %v619_v9 }
  0x7c   :  { %622 = vmatprep.subr.bf16.mxu0 %v621_v10 }
  0x7e   :  { %612 = vmatpush1.bf16.msra.mxu1 %v611_v59 }
  0x7f   :  { %614 = vmatprep.subr.bf16.mxu1 %v613_v62  ;;  %624 = vmatpush3.bf16.msra.mxu0 %v623_v15 }
  0x80   :  { %626 = vmatprep.subr.bf16.mxu0 %v625_v16 }
  0x82   :  { %616 = vmatpush1.bf16.msra.mxu1 %v615_v1 }
  0x83   :  { %628 = vmatpush3.bf16.msra.mxu0 %v627_v21 }
  0x84   :  { %630 = vmatprep.subr.bf16.mxu0 %v629_v22 }
  0x87   :  { %632 = vmatpush3.bf16.msra.mxu0 %v631_v27 }
  0x88   :  { %634 = vmatprep.subr.bf16.mxu0 %v633_v28 }
  0x8b   :  { %636 = vmatpush3.bf16.msra.mxu0 %v635_v33 }
  0x8c   :  { %638 = vmatprep.subr.bf16.mxu0 %v637_v34 }
  0x8f   :  { %640 = vmatpush3.bf16.msra.mxu0 %v639_v39 }
  0x90   :  { %642 = vmatprep.subr.bf16.mxu0 %v641_v40 }
  0x93   :  { %644 = vmatpush3.bf16.msra.mxu0 %v643_v43 }
  0x94   :  { %646 = vmatprep.subr.bf16.mxu0 %v645_v50 }
  0x97   :  { %648 = vmatpush3.bf16.msra.mxu0 %v647_v53 }
 0x14d   :  { %v191_v44 = vpop.f32.mrb[0].mxu0 }
 0x14e   :  { %v193_v45 = vpop.f32.mrb[1].mxu0  ;;  %v196_v47 = vmax.f32 %v191_v44, 0.0 }
 0x14f   :  { %v197_v46 = vmax.f32 %v193_v45, 0.0 }
 0x151   :  { %326 = vmatprep.mubr.f32.mxu1 %v197_v46 }
 0x152   :  { %327 = vmatmul.mubr.f32.vlgmr.msra.gmra.mrb[0].mxu1 %v196_v47 }
 0x225   :  { %v328_v54 = vpop.f32.mrb[0].mxu1 }
 0x226   :  { %v330_v55 = vpop.f32.mrb[1].mxu1  ;;  %v333_v57 = vmax.f32 %v328_v54, 0.0 }
 0x227   :  { %v334_v56 = vmax.f32 %v330_v55, 0.0 }
 0x229   :  { %431 = vmatprep.mubr.f32.mxu0 %v334_v56 }
 0x22a   :  { %432 = vmatmul.mubr.f32.vlgmr.msra.gmra.mrb[2].mxu0 %v333_v57 }
 0x2fd   :  { %v486_v58 = vpop.f32.mrb[2].mxu0 }
 0x2fe   :  { %v487_v59 = vpop.f32.mrb[3].mxu0 }
 0x2ff   :  { %v488_v60 = vadd.f32 %v487_v59, %v486_v58 }
 0x301   :  { %437 = vst [vmem:[#allocation8] sm:$0xff] %v488_v60 }
 0x302   :  { %734 = shalt.err (!%p731_p0)
}
 0x303   :  { %s735_s8 = scalar_lea.hbm %s849_s4, 128 }
 0x304   :  { %p736_p1 = scmp.ne.s32.totalorder %s849_s4, %s735_s8  ;;  %p739_p2 = scmp.lt.u32.totalorder %s735_s8, %s849_s4 }
 0x306   :  { %p741_p3 = pnand %p739_p2, %p736_p1 }
 0x308   :  { %744 = shalt.err (!%p741_p3)
}
 0x309   :  { %447 = dma.vmem_to_hbm [thread:$0]  %s445_s30, 128, %s849_s4, [#allocation4]  }
 0x30a   :  { %749 = dma.done.wait [#allocation4], 128  }
 0x30b   :  { %750 = vsyncadd [#allocation4], 4294967168 }
 0x30c   :  { %451 = vsyncpa [#allocation3], 1 }
 0x30d   :  { %452 = vsyncpa [#allocation6], 1 }
 0x30e   :  { %453 = vsyncpa [#allocation4], 1 }

</bundles_post_ra>
